<compile_context>
chip_gen: v7x
topology: tpu7x:2x2x1
jax: 0.10.0
libtpu: 0.0.40
codegen_flags: <defaults>
</compile_context>

<pallas_src>
import functools

import jax
import jax.numpy as jnp
from jax.experimental import pallas as pl
from jax.experimental.pallas import tpu as pltpu

LANE = 512            # lane-dense slab width (multiple of 128)
MAX_BLOCK_ROWS = 512  # 512 x 512 f32 = 1 MiB per input block (fits all gens)


def _sum_loss_kernel(pred_ref, tgt_ref, out_ref, acc_ref, *, mode):
    """Accumulates sum(elementwise_loss) across the grid; writes total at the end."""
    i = pl.program_id(0)

    @pl.when(i == 0)
    def _():
        acc_ref[...] = jnp.zeros_like(acc_ref)

    x = pred_ref[...].astype(jnp.float32)
    y = tgt_ref[...].astype(jnp.float32)

    if mode == "bce":
        # numerically stable BCE-with-logits: max(x,0) - x*y + log1p(exp(-|x|))
        val = jnp.maximum(x, 0.0) - x * y + jnp.log1p(jnp.exp(-jnp.abs(x)))
    else:  # smooth_l1, beta = 1.0
        d = x - y
        ad = jnp.abs(d)
        val = jnp.where(ad < 1.0, 0.5 * d * d, ad - 0.5)

    # Pure-VPU accumulation; the cross-lane reduce is deferred to the last step.
    acc_ref[...] += val

    @pl.when(i == pl.num_programs(0) - 1)
    def _():
        out_ref[0, 0] = jnp.sum(acc_ref[...])


def _lane_dense(a, pad_value):
    """Flatten -> pad -> (rows, LANE) slab; rows is a multiple of the block height."""
    flat = jnp.ravel(a)
    n = flat.size
    rows = max(1, (n + LANE - 1) // LANE)
    rows = ((rows + 7) // 8) * 8                       # sublane multiple
    block_rows = min(MAX_BLOCK_ROWS, rows)             # also a multiple of 8
    rows = ((rows + block_rows - 1) // block_rows) * block_rows
    pad = rows * LANE - n
    flat = jnp.pad(flat, (0, pad), constant_values=pad_value)
    return flat.reshape(rows, LANE), block_rows


def _reduce_loss(pred, tgt, mode, pred_pad, tgt_pad):
    """Returns mean(elementwise_loss(pred, tgt)) as a scalar."""
    n = pred.size  # true element count (static)
    p2d, block_rows = _lane_dense(pred, pred_pad)
    t2d, _ = _lane_dense(tgt, tgt_pad)
    rows = p2d.shape[0]
    grid = (rows // block_rows,)

    itemsize = jnp.dtype(pred.dtype).itemsize
    cost = pl.CostEstimate(
        flops=6 * n,
        transcendentals=(2 * n) if mode == "bce" else 0,
        bytes_accessed=2 * n * itemsize + 4,
    )

    kernel = functools.partial(_sum_loss_kernel, mode=mode)
    total = pl.pallas_call(
        kernel,
        out_shape=jax.ShapeDtypeStruct((1, 1), jnp.float32),
        grid=grid,
        in_specs=[
            pl.BlockSpec((block_rows, LANE), lambda i: (i, 0)),
            pl.BlockSpec((block_rows, LANE), lambda i: (i, 0)),
        ],
        out_specs=pl.BlockSpec(memory_space=pltpu.SMEM),
        scratch_shapes=[pltpu.VMEM((block_rows, LANE), jnp.float32)],
        compiler_params=pltpu.CompilerParams(
            dimension_semantics=("arbitrary",),
        ),
        cost_estimate=cost,
    )(p2d, t2d)

    # Normalize by the TRUE element count (not the padded one).
    return total[0, 0] / jnp.float32(n)


def detection_loss(conf_preds, loc_preds, conf_targets, loc_targets):
    """Pallas implementation of DetectionLoss.forward (returns a scalar)."""
    # BCE pad: logits = -1e4, target = 0  ->  max(.,0)=0, -x*y=0, log1p(exp(-1e4))=0
    conf_loss = _reduce_loss(conf_preds, conf_targets, "bce",
                             pred_pad=-1e4, tgt_pad=0.0)
    # SmoothL1 pad: pred = target = 0 -> diff = 0 -> loss = 0
    loc_loss = _reduce_loss(loc_preds, loc_targets, "smooth_l1",
                            pred_pad=0.0, tgt_pad=0.0)
    return conf_loss + loc_loss


if __name__ == "__main__":
    key = jax.random.PRNGKey(0)
    k1, k2, k3, k4 = jax.random.split(key, 4)

    B, A, C = 2, 64, 2  # batch, anchors, classes
    conf_preds = jax.random.normal(k1, (B, A, C), jnp.float32)
    conf_targets = (jax.random.uniform(k2, (B, A, C)) > 0.5).astype(jnp.float32)
    loc_preds = jax.random.normal(k3, (B, A, 4), jnp.float32)
    loc_targets = jax.random.normal(k4, (B, A, 4), jnp.float32)

    result = detection_loss(conf_preds, loc_preds, conf_targets, loc_targets)
    result = jax.block_until_ready(result)

    # Pure-JAX reference (same math as torch BCEWithLogitsLoss + SmoothL1Loss)
    x, y = conf_preds, conf_targets
    ref_conf = jnp.mean(jnp.maximum(x, 0.0) - x * y + jnp.log1p(jnp.exp(-jnp.abs(x))))
    d = loc_preds - loc_targets
    ref_loc = jnp.mean(jnp.where(jnp.abs(d) < 1.0, 0.5 * d * d, jnp.abs(d) - 0.5))
    ref = ref_conf + ref_loc
    assert jnp.allclose(result, ref, rtol=1e-5, atol=1e-5), (result, ref)

    print("KERNEL_OK")
</pallas_src>

<mosaic_0001>
module attributes {stable_mosaic.version = 11 : i64} {
  func.func @_sum_loss_kernel(%arg0: i32, %arg1: memref<8x512xf32, #tpu.memory_space<vmem>>, %arg2: memref<8x512xf32, #tpu.memory_space<vmem>>, %arg3: memref<1x1xf32, #tpu.memory_space<smem>>, %arg4: memref<8x512xf32, #tpu.memory_space<vmem>>) attributes {dimension_semantics = [#tpu.dimension_semantics<arbitrary>], iteration_bounds = array<i64: 1>, scalar_prefetch = 0 : i64, scratch_operands = 1 : i64, tpu.core_type = #tpu.core_type<tc>, window_params = [{transform_indices = @transform_0, window_bounds = array<i64: 8, 512>}, {transform_indices = @transform_1, window_bounds = array<i64: 8, 512>}, {transform_indices = @transform_2, window_bounds = array<i64: 1, 1>}]} {
    %c0_i32 = arith.constant 0 : i32
    %0 = arith.cmpi eq, %arg0, %c0_i32 : i32
    %1 = arith.extui %0 : i1 to i32
    %c0_i32_0 = arith.constant 0 : i32
    %2 = arith.cmpi ne, %1, %c0_i32_0 : i32
    scf.if %2 {
      %cst_11 = arith.constant 0.000000e+00 : f32
      %21 = vector.broadcast %cst_11 : f32 to vector<8x512xf32>
      %c0_12 = arith.constant 0 : index
      %c0_13 = arith.constant 0 : index
      %22 = vector.load %arg4[%c0_12, %c0_13] : memref<8x512xf32, #tpu.memory_space<vmem>>, vector<8x512xf32>
      tpu.vector_store %arg4[%c0_12, %c0_13], %21 {strides = array<i32>} : memref<8x512xf32, #tpu.memory_space<vmem>>, vector<8x512xf32>,
    } else {
    }
    %c0 = arith.constant 0 : index
    %c0_1 = arith.constant 0 : index
    %3 = vector.load %arg1[%c0, %c0_1] : memref<8x512xf32, #tpu.memory_space<vmem>>, vector<8x512xf32>
    %c0_2 = arith.constant 0 : index
    %c0_3 = arith.constant 0 : index
    %4 = vector.load %arg2[%c0_2, %c0_3] : memref<8x512xf32, #tpu.memory_space<vmem>>, vector<8x512xf32>
    %cst = arith.constant 0.000000e+00 : f32
    %5 = vector.broadcast %cst : f32 to vector<8x512xf32>
    %6 = arith.maximumf %3, %5 : vector<8x512xf32>
    %7 = arith.mulf %3, %4 : vector<8x512xf32>
    %8 = arith.subf %6, %7 : vector<8x512xf32>
    %9 = math.absf %3 : vector<8x512xf32>
    %cst_4 = arith.constant 0.000000e+00 : f32
    %10 = vector.broadcast %cst_4 : f32 to vector<8x512xf32>
    %11 = arith.subf %10, %9 : vector<8x512xf32>
    %12 = math.exp %11 : vector<8x512xf32>
    %13 = math.log1p %12 : vector<8x512xf32>
    %14 = arith.addf %8, %13 : vector<8x512xf32>
    %c0_5 = arith.constant 0 : index
    %c0_6 = arith.constant 0 : index
    %15 = vector.load %arg4[%c0_5, %c0_6] : memref<8x512xf32, #tpu.memory_space<vmem>>, vector<8x512xf32>
    %16 = arith.addf %15, %14 : vector<8x512xf32>
    %c0_7 = arith.constant 0 : index
    %c0_8 = arith.constant 0 : index
    %17 = vector.load %arg4[%c0_7, %c0_8] : memref<8x512xf32, #tpu.memory_space<vmem>>, vector<8x512xf32>
    tpu.vector_store %arg4[%c0_7, %c0_8], %16 {strides = array<i32>} : memref<8x512xf32, #tpu.memory_space<vmem>>, vector<8x512xf32>,
    %c0_i32_9 = arith.constant 0 : i32
    %18 = arith.cmpi eq, %arg0, %c0_i32_9 : i32
    %19 = arith.extui %18 : i1 to i32
    %c0_i32_10 = arith.constant 0 : i32
    %20 = arith.cmpi ne, %19, %c0_i32_10 : i32
    scf.if %20 {
      %c0_11 = arith.constant 0 : index
      %c0_12 = arith.constant 0 : index
      %21 = vector.load %arg4[%c0_11, %c0_12] : memref<8x512xf32, #tpu.memory_space<vmem>>, vector<8x512xf32>
      %22 = vector.shape_cast %21 : vector<8x512xf32> to vector<1x8x512xf32>
      %cst_13 = arith.constant dense<0.000000e+00> : vector<1xf32>
      %23 = vector.multi_reduction <add>, %22, %cst_13 [1, 2] : vector<1x8x512xf32> to vector<1xf32>
      %24 = vector.shape_cast %23 : vector<1xf32> to vector<1x1x1xf32>
      %25 = vector.extract %24[0, 0, 0] : f32 from vector<1x1x1xf32>
      %c0_14 = arith.constant 0 : index
      %c0_15 = arith.constant 0 : index
      %26 = memref.load %arg3[%c0_14, %c0_15] : memref<1x1xf32, #tpu.memory_space<smem>>
      memref.store %25, %arg3[%c0_14, %c0_15] : memref<1x1xf32, #tpu.memory_space<smem>>
    } else {
    }
    return
  }
  func.func @transform_0(%arg0: i32) -> (i32, i32) {
    %c0_i32 = arith.constant 0 : i32
    %c0_i32_0 = arith.constant 0 : i32
    return %arg0, %c0_i32 : i32, i32
  }
  func.func @transform_1(%arg0: i32) -> (i32, i32) {
    %c0_i32 = arith.constant 0 : i32
    %c0_i32_0 = arith.constant 0 : i32
    return %arg0, %c0_i32 : i32, i32
  }
  func.func @transform_2(%arg0: i32) -> (i32, i32) {
    %c0_i32 = arith.constant 0 : i32
    %c0_i32_0 = arith.constant 0 : i32
    %c0_i32_1 = arith.constant 0 : i32
    return %c0_i32, %c0_i32_0 : i32, i32
  }
}

</mosaic_0001>

<bundles_post_ra>
// kernel: tpu_custom_call.1
= control target key start
LH: loop header
LB: loop body
LE: loop exit
PB: predicated region body
PF: predicated region fallthrough
CT: control target
= control target key end

     0   :  { %7 = vsyncpa [#allocation4], 0  ;;  %s325_s0 = inlined_call_operand.hbm [shape: f32[8,512], index: 0, kind: input, shape index: {}]   ;;  %s326_s1 = inlined_call_operand.hbm [shape: f32[8,512], index: 1, kind: input, shape index: {}]   ;;  %s327_s2 = inlined_call_operand.hbm [shape: f32[1,1], index: 2, kind: output, shape index: {}]  }
   0x1   :  { %8 = vsyncpa [#allocation7], 0 }
   0x2   :  { %9 = vsyncpa [#allocation5], 0  ;;  %s249_s9 = smov [#allocation3]   ;;  %s250_s11 = smov [#allocation6]  }
   0x3   :  { %s16_s10 = sshll.u32 %s249_s9, 4  ;;  %s26_s12 = sshll.u32 %s250_s11, 4  ;;  %s17_s10 = int_to_ptr.vmem [resolvable:$true] %s16_s10  ;;  %s27_s12 = int_to_ptr.vmem [resolvable:$true] %s26_s12 }
   0x4   :  { %s189_s15 = scalar_lea.hbm %s325_s0, 512 }
   0x5   :  { %p190_p0 = scmp.ne.s32.totalorder %s325_s0, %s189_s15  ;;  %p193_p1 = scmp.lt.u32.totalorder %s189_s15, %s325_s0 }
   0x7   :  { %p195_p2 = pnand %p193_p1, %p190_p0 }
   0x9   :  { %198 = shalt.err (!%p195_p2)
}
   0xa   :  { %s199_s20 = scalar_lea.vmem %s17_s10, 512  ;;  %p204_p4 = scmp.lt.s32.totalorder %s17_s10, %s17_s10 }
   0xb   :  { %p200_p3 = scmp.ne.s32.totalorder %s17_s10, %s199_s20  ;;  %p205_p5 = scmp.lt.s32.totalorder %s199_s20, %s199_s20 }
   0xd   :  { %p206_p6 = por %p205_p5, %p204_p4 }
   0xf   :  { %p207_p7 = pnand %p206_p6, %p200_p3 }
  0x11   :  { %210 = shalt.err (!%p207_p7)
}
  0x12   :  { %19 = dma.hbm_to_vmem [thread:$0]  %s325_s0, 512, %s17_s10, [#allocation4]  }
  0x13   :  { %s211_s25 = scalar_lea.hbm %s326_s1, 512 }
  0x14   :  { %p212_p8 = scmp.ne.s32.totalorder %s326_s1, %s211_s25  ;;  %p215_p9 = scmp.lt.u32.totalorder %s211_s25, %s326_s1 }
  0x16   :  { %p217_p10 = pnand %p215_p9, %p212_p8 }
  0x18   :  { %220 = shalt.err (!%p217_p10)
}
  0x19   :  { %s221_s30 = scalar_lea.vmem %s27_s12, 512  ;;  %p226_p12 = scmp.lt.s32.totalorder %s27_s12, %s27_s12 }
  0x1a   :  { %p222_p11 = scmp.ne.s32.totalorder %s27_s12, %s221_s30  ;;  %p227_p13 = scmp.lt.s32.totalorder %s221_s30, %s221_s30 }
  0x1c   :  { %p228_p0 = por %p227_p13, %p226_p12 }
  0x1e   :  { %p229_p1 = pnand %p228_p0, %p222_p11 }
  0x20   :  { %232 = shalt.err (!%p229_p1)
}
  0x21   :  { %29 = dma.hbm_to_vmem [thread:$0]  %s326_s1, 512, %s27_s12, [#allocation7]  }
  0x22   :  { %243 = dma.done.wait [#allocation4], 512  }
  0x23   :  { %244 = vsyncadd [#allocation4], 4294966784 }
  0x24   :  { %245 = dma.done.wait [#allocation7], 512  }
  0x25   :  { %246 = vsyncadd [#allocation7], 4294966784  ;;  %v44_v0 = vld [vmem:[#allocation3] sm:$0xff]  ;;  %v45_v1 = vld [vmem:[#allocation3 + $0x8] sm:$0xff]  ;;  %s233_s6 = scalar_lea.hbm %s327_s2, 16 }
  0x26   :  { %v291_v2 = vld [vmem:[#allocation3 + $0x10] sm:$0xff]  ;;  %v293_v3 = vld [vmem:[#allocation3 + $0x18] sm:$0xff]  ;;  %v64_v4 = vand.u32 2147483647, %v44_v0  ;;  %v65_v5 = vand.u32 2147483647, %v45_v1  ;;  %p234_p2 = scmp.ne.s32.totalorder %s327_s2, %s233_s6  ;;  %p237_p3 = scmp.lt.u32.totalorder %s233_s6, %s327_s2 }
  0x27   :  { %v66_v6 = vand.u32 2147483647, %v291_v2  ;;  %v67_v7 = vand.u32 2147483647, %v293_v3  ;;  %v48_v26 = vld [vmem:[#allocation6] sm:$0xff]  ;;  %v49_v28 = vld [vmem:[#allocation6 + $0x8] sm:$0xff] }
  0x28   :  { %v68_v8 = vsub.f32 0.0, %v64_v4  ;;  %v69_v9 = vsub.f32 0.0, %v65_v5  ;;  %v50_v29 = vld [vmem:[#allocation6 + $0x10] sm:$0xff]  ;;  %v51_v32 = vld [vmem:[#allocation6 + $0x18] sm:$0xff]  ;;  %v52_v33 = vmax.f32 %v44_v0, 0.0  ;;  %v56_v34 = vmul.f32 %v48_v26, %v44_v0  ;;  %p239_p4 = pnand %p237_p3, %p234_p2 }
  0x29   :  { %v70_v10 = vsub.f32 0.0, %v66_v6  ;;  %v71_v11 = vsub.f32 0.0, %v67_v7  ;;  %v53_v37 = vmax.f32 %v45_v1, 0.0  ;;  %v57_v38 = vmul.f32 %v49_v28, %v45_v1 }
  0x2a   :  { %v72_v12 = vmul.f32 1.442695, %v68_v8  ;;  %v74_v13 = vmul.f32 1.442695, %v69_v9  ;;  %v54_v41 = vmax.f32 %v291_v2, 0.0  ;;  %v58_v42 = vmul.f32 %v50_v29, %v291_v2 }
  0x2b   :  { %v76_v14 = vmul.f32 1.442695, %v70_v10  ;;  %v78_v15 = vmul.f32 1.442695, %v71_v11  ;;  %v55_v44 = vmax.f32 %v293_v3, 0.0  ;;  %v59_v45 = vmul.f32 %v51_v32, %v293_v3 }
  0x2c   :  { %173 = vpow2.f32 %v72_v12  ;;  %v60_v49 = vsub.f32 %v52_v33, %v56_v34  ;;  %v61_v54 = vsub.f32 %v53_v37, %v57_v38  ;;  %v62_v59 = vsub.f32 %v54_v41, %v58_v42 }
  0x2d   :  { %175 = vpow2.f32 %v74_v13  ;;  %v63_v1 = vsub.f32 %v55_v44, %v59_v45 }
  0x2e   :  { %177 = vpow2.f32 %v76_v14 }
  0x2f   :  { %179 = vpow2.f32 %v78_v15 }
  0x36   :  { %v174_v16 = vpop.eup %173 }
  0x37   :  { %v176_v17 = vpop.eup %175  ;;  %v80_v18 = vadd.f32 1.0, %v174_v16  ;;  %v83_v23 = vmul.f32 -0.5, %v174_v16  ;;  %v86_v35 = vand.u32 2147483647, %v174_v16 }
  0x38   :  { %v178_v19 = vpop.eup %177  ;;  %v89_v20 = vadd.f32 1.0, %v176_v17  ;;  %v92_v24 = vmul.f32 -0.5, %v176_v17  ;;  %v95_v39 = vand.u32 2147483647, %v176_v17 }
  0x39   :  { %v180_v21 = vpop.eup %179  ;;  %181 = vlog2.f32 %v80_v18  ;;  %v98_v22 = vadd.f32 1.0, %v178_v19  ;;  %v101_v27 = vmul.f32 -0.5, %v178_v19  ;;  %v84_v30 = vadd.f32 1.0, %v83_v23 }
  0x3a   :  { %183 = vlog2.f32 %v89_v20  ;;  %v107_v25 = vadd.f32 1.0, %v180_v21  ;;  %v110_v31 = vmul.f32 -0.5, %v180_v21  ;;  %v93_v36 = vadd.f32 1.0, %v92_v24 }
  0x3b   :  { %185 = vlog2.f32 %v98_v22  ;;  %v102_v40 = vadd.f32 1.0, %v101_v27  ;;  %v104_v43 = vand.u32 2147483647, %v178_v19  ;;  %v85_v46 = vmul.f32 %v174_v16, %v84_v30 }
  0x3c   :  { %187 = vlog2.f32 %v107_v25  ;;  %v111_v47 = vadd.f32 1.0, %v110_v31  ;;  %vm301_vm0 = vcmp.lt.f32.partialorder %v86_v35, 0.0004427343  ;;  %v94_v51 = vmul.f32 %v176_v17, %v93_v36 }
  0x3d   :  { %v113_v52 = vand.u32 2147483647, %v180_v21  ;;  %vm305_vm1 = vcmp.lt.f32.partialorder %v95_v39, 0.0004427343  ;;  %v103_v57 = vmul.f32 %v178_v19, %v102_v40  ;;  %vm105_vm2 = vcmp.lt.f32.partialorder %v104_v43, 0.0004427343 }
  0x3e   :  { %v112_v63 = vmul.f32 %v180_v21, %v111_v47 }
  0x3f   :  { %vm114_vm3 = vcmp.lt.f32.partialorder %v113_v52, 0.0004427343 }
  0x43   :  { %v182_v48 = vpop.eup %181 }
  0x44   :  { %v184_v53 = vpop.eup %183  ;;  %v82_v55 = vmul.f32 0.6931472, %v182_v48 }
  0x45   :  { %v186_v58 = vpop.eup %185  ;;  %v91_v60 = vmul.f32 0.6931472, %v184_v53 }
  0x46   :  { %v88_v61 = vsel %vm301_vm0, %v85_v46, %v82_v55  ;;  %v100_v62 = vmul.f32 0.6931472, %v186_v58  ;;  %v188_v0 = vpop.eup %187 }
  0x47   :  { %v97_v2 = vsel %vm305_vm1, %v94_v51, %v91_v60  ;;  %v116_v3 = vadd.f32 %v88_v61, %v60_v49  ;;  %v109_v5 = vmul.f32 0.6931472, %v188_v0 }
  0x48   :  { %v106_v4 = vsel %vm105_vm2, %v103_v57, %v100_v62  ;;  %v117_v6 = vadd.f32 %v97_v2, %v61_v54 }
  0x49   :  { %v118_v7 = vadd.f32 %v106_v4, %v62_v59  ;;  %v115_v8 = vsel %vm114_vm3, %v112_v63, %v109_v5 }
  0x4a   :  { %v139_v9 = vadd.f32 %v117_v6, %v116_v3  ;;  %v119_v10 = vadd.f32 %v115_v8, %v63_v1 }
  0x4c   :  { %v140_v11 = vadd.f32 %v139_v9, %v118_v7 }
  0x4e   :  { %v141_v12 = vadd.f32 %v140_v11, %v119_v10 }
  0x50   :  { %142 = vadd.xlane.f32.xlu0 %v141_v12 }
  0xdd   :  { %v143_v13 = vpop.xlane.xlu0 %142 }
  0xde   :  { %v144_v14 = vrot.slane %v143_v13, 4 }
  0xe0   :  { %v145_v15 = vadd.f32 %v144_v14, %v143_v13 }
  0xe2   :  { %v146_v16 = vrot.slane %v145_v15, 2 }
  0xe4   :  { %v147_v17 = vadd.f32 %v146_v16, %v145_v15 }
  0xe6   :  { %v148_v18 = vrot.slane %v147_v17, 1 }
  0xe8   :  { %v149_v19 = vadd.f32 %v148_v18, %v147_v17 }
  0xea   :  { %168 = vpush %v149_v19 }
 0x11b   :  { %s169_s1 = spop %168 }
 0x11c   :  { %152 = sst [smem:[#allocation8]] %s169_s1 }
 0x11d   :  { %242 = shalt.err (!%p239_p4)
}
 0x11e   :  { %s251_s11 = smov [#allocation8]  }
 0x11f   :  { %160 = dma.smem_to_hbm %s251_s11, 16, %s327_s2, [#allocation5]  }
 0x120   :  { %247 = dma.done.wait [#allocation5], 16  }
 0x121   :  { %248 = vsyncadd [#allocation5], 4294967280 }
 0x122   :  { %164 = sfence }
 0x123   :  { %165 = vsyncpa [#allocation4], 1 }
 0x124   :  { %166 = vsyncpa [#allocation7], 1 }
 0x125   :  { %167 = vsyncpa [#allocation5], 1 }

</bundles_post_ra>
